<compile_context>
chip_gen: v7x
topology: tpu7x:2x2x1
jax: 0.10.0
libtpu: 0.0.40
codegen_flags: <defaults>
</compile_context>

<pallas_src>
import jax
import jax.numpy as jnp
from jax.experimental import pallas as pl
from jax.experimental.pallas import tpu as pltpu


# -----------------------------------------------------------------------------
# Fused Pallas kernel: all blocks + avg-pool (one grid step = one batch tile)
# -----------------------------------------------------------------------------
def _encoder_fused_kernel(*refs):
    """refs = (x, M1, b1, M2, b2, ..., Mn, bn, pool, out).

    x:    (TILE_B, C0*L0)            input slab, flattened NCL row order
                                     (the NCL->NLC permutation is folded
                                      into M1's rows offline)
    Mi:   (Win_i, Wout_i)            folded conv+BN+identity operator (bf16/f32)
    bi:   (1, Wout_i)                folded bias, f32 (added in f32 epilogue)
    pool: (Wout_n, Cout_n)           averaging matrix (AdaptiveAvgPool1d(1))
    out:  (TILE_B, Cout_n)           f32
    """
    x_ref = refs[0]
    o_ref = refs[-1]
    pool_ref = refs[-2]
    block_refs = refs[1:-2]
    n_blocks = len(block_refs) // 2

    cdt = block_refs[0].dtype                      # compute dtype (bf16 or f32)
    h = x_ref[...].astype(cdt)
    for i in range(n_blocks):
        m = block_refs[2 * i][...]
        b = block_refs[2 * i + 1][...]
        y = jnp.dot(h, m, preferred_element_type=jnp.float32) + b   # f32 acc
        h = jnp.maximum(y, jnp.float32(0.0)).astype(cdt)            # ReLU
    # AdaptiveAvgPool1d(1) as a matmul against the averaging matrix.
    o_ref[...] = jnp.dot(h, pool_ref[...],
                         preferred_element_type=jnp.float32).astype(o_ref.dtype)


# -----------------------------------------------------------------------------
# One-time parameter preparation (BN + downsample folding, dense operators)
# -----------------------------------------------------------------------------
def _fold_block(p, eps=1e-5):
    """Fold BatchNorm (eval) and the 1x1 downsample conv into (w, b)."""
    # Tap-pad folding of the 1x1 downsample branch is only valid for odd K
    # (pad = K//2 and matching l_out).
    assert p["k"] % 2 == 1, "even kernel sizes not supported by the fold"
    w, b = p["w"], p["b"]                                   # (Cout,Cin,K), (Cout,)
    scale = p["g"] * jax.lax.rsqrt(p["rv"] + eps)           # (Cout,)
    w_bn = w * scale[:, None, None]
    b_bn = (b - p["rm"]) * scale + p["be"]
    # Downsample conv reads x[:, :, j*s]  ==  tap t = pad of the padded window
    # (always in-bounds), so it folds into that tap of the main conv.
    w_f = w_bn.at[:, :, p["pad"]].add(p["wds"][:, :, 0])
    b_f = b_bn + p["bds"]
    return w_f, b_f


def _dense_conv_operator(w_f, L, s, pad):
    """Strided conv (pad=k//2) as a dense (L*Cin, Lout*Cout) operator.

    Row index = l*Cin + ci  (input flattened [time][channel]),
    Col index = j*Cout + co (output flattened [time][channel]).
    """
    Cout, Cin, K = w_f.shape
    l_out = (L + 2 * pad - K) // s + 1
    j = jnp.arange(l_out)
    t = jnp.arange(K)
    src = j[:, None] * s + t[None, :] - pad                 # (l_out, K) input idx
    valid = (src >= 0) & (src < L)                          # zero padding
    onehot = ((jnp.arange(L)[:, None, None] == src[None]) &
              valid[None]).astype(jnp.float32)              # (L, l_out, K)
    w_tic = jnp.transpose(w_f, (2, 1, 0))                   # (K, Cin, Cout)
    M = jnp.einsum("ljt,tio->lijo", onehot, w_tic)          # (L, Cin, l_out, Cout)
    return M.reshape(L * Cin, l_out * Cout), l_out


def prepare_operators(params, L, eps=1e-5, dtype=jnp.bfloat16):
    """One-time prep: folded dense operators + biases + pooling matrix.

    dtype=bfloat16 halves the per-call weight-DMA bytes (the binding cost at
    small batch) and hits the native bf16 MXU path; dtype=float32 is kept for
    tight validation.  Biases stay f32 (added in the f32 epilogue).
    """
    ops = []
    cur_L = L
    for idx, p in enumerate(params):
        w_f, b_f = _fold_block(p, eps)
        M, l_out = _dense_conv_operator(w_f, cur_L, p["s"], p["pad"])
        if idx == 0:
            # Fold the NCL->NLC permutation into M1's row ordering so the
            # per-call input prep is a pure reshape (no transpose launch).
            Cin = p["w"].shape[1]
            M = (M.reshape(cur_L, Cin, -1)
                   .transpose(1, 0, 2)
                   .reshape(Cin * cur_L, -1))
        bvec = jnp.tile(b_f, l_out).reshape(1, -1).astype(jnp.float32)
        ops.append((M.astype(dtype), bvec))
        cur_L = l_out
    cout = params[-1]["w"].shape[0]
    pool = (jnp.tile(jnp.eye(cout, dtype=jnp.float32), (cur_L, 1))
            / jnp.float32(cur_L)).astype(dtype)
    return ops, pool                                         # pool: (l_out*Cout, Cout)


# -----------------------------------------------------------------------------
# Forward pass (single pallas_call, batch-tiled grid, weights resident)
# -----------------------------------------------------------------------------
def encoder_forward(x_ncl, ops, pool, *, tile_b=8):
    """x_ncl: (B, C_in, L) PyTorch layout -> (B, C_out, 1)."""
    B, C, L = x_ncl.shape
    cout = pool.shape[1]
    assert B % tile_b == 0, (B, tile_b)
    W0 = C * L
    # NCL row order folded into M1 offline -> reshape only (layout bitcast).
    x_flat = x_ncl.reshape(B, W0).astype(jnp.float32)

    flat_args = [x_flat]
    in_specs = [pl.BlockSpec((tile_b, W0), lambda b: (b, 0))]
    for M, bvec in ops:
        flat_args += [M, bvec]
        # index_map -> block (0, 0) for every grid step: operators stay
        # resident in VMEM, DMA'd from HBM exactly once per call.
        in_specs += [pl.BlockSpec(M.shape, lambda b: (0, 0)),
                     pl.BlockSpec(bvec.shape, lambda b: (0, 0))]
    flat_args.append(pool)
    in_specs.append(pl.BlockSpec(pool.shape, lambda b: (0, 0)))

    pooled = pl.pallas_call(
        _encoder_fused_kernel,
        out_shape=jax.ShapeDtypeStruct((B, cout), jnp.float32),
        grid=(B // tile_b,),
        in_specs=in_specs,
        out_specs=pl.BlockSpec((tile_b, cout), lambda b: (b, 0)),
        compiler_params=pltpu.CompilerParams(
            dimension_semantics=("parallel",)),          # megacore on v7x
    )(*flat_args)
    return pooled[:, :, None]                               # (B, C_out, 1)


# -----------------------------------------------------------------------------
# Pure-JAX reference (NCL layout, lax.conv) used only for validation
# -----------------------------------------------------------------------------
def reference_forward(x_ncl, params, eps=1e-5):
    x = x_ncl.astype(jnp.float32)
    dn = ("NCH", "OIH", "NCH")
    for p in params:
        y = jax.lax.conv_general_dilated(
            x, p["w"], window_strides=(p["s"],),
            padding=[(p["pad"], p["pad"])], dimension_numbers=dn)
        y = y + p["b"][None, :, None]
        y = ((y - p["rm"][None, :, None])
             / jnp.sqrt(p["rv"][None, :, None] + eps)
             * p["g"][None, :, None] + p["be"][None, :, None])
        ident = jax.lax.conv_general_dilated(
            x, p["wds"], window_strides=(p["s"],),
            padding=[(0, 0)], dimension_numbers=dn) + p["bds"][None, :, None]
        x = jnp.maximum(y + ident, 0.0)
    return jnp.mean(x, axis=2, keepdims=True)


# -----------------------------------------------------------------------------
# Deterministic parameter construction (mirrors Encoder.__init__)
# -----------------------------------------------------------------------------
def make_params(key, in_channels, out_channels, kernel_sizes, strides):
    params = []
    channels = in_channels
    for k, s in zip(kernel_sizes, strides):
        next_c = channels
        if channels < out_channels:
            next_c = min(next_c * 2, out_channels)
        key, k1, k2, k3, k4 = jax.random.split(key, 5)
        # xavier_normal_ for conv weights
        fan_in, fan_out = channels * k, next_c * k
        std = (2.0 / (fan_in + fan_out)) ** 0.5
        w = std * jax.random.normal(k1, (next_c, channels, k), jnp.float32)
        b = (1.0 / fan_in ** 0.5) * jax.random.uniform(
            k2, (next_c,), jnp.float32, -1.0, 1.0)
        std_ds = (2.0 / (channels + next_c)) ** 0.5
        wds = std_ds * jax.random.normal(k3, (next_c, channels, 1), jnp.float32)
        bds = (1.0 / channels ** 0.5) * jax.random.uniform(
            k4, (next_c,), jnp.float32, -1.0, 1.0)
        params.append(dict(
            w=w, b=b, wds=wds, bds=bds,
            g=jnp.ones((next_c,), jnp.float32),       # BN weight init = 1
            be=jnp.zeros((next_c,), jnp.float32),     # BN bias init = 0
            rm=jnp.zeros((next_c,), jnp.float32),     # running mean
            rv=jnp.ones((next_c,), jnp.float32),      # running var
            k=k, s=s, pad=k // 2))
        channels = next_c
    return params


if __name__ == "__main__":
    # Small config: in_channels=4, out_channels=32, 3 blocks, length 64.
    # B=16 with TILE_B=8 -> grid=(2,): exercises the batch-tiled grid with
    # VMEM-resident folded operators and an (8,128)-aligned LHS tile.
    B, C_IN, L = 16, 4, 64
    OUT_CHANNELS = 32
    KERNEL_SIZES = [7, 5, 3]
    STRIDES = [2, 2, 2]
    TILE_B = 8

    key = jax.random.PRNGKey(0)
    key, kx = jax.random.split(key)
    x = jax.random.normal(kx, (B, C_IN, L), jnp.float32)     # PyTorch NCL input

    params = make_params(key, C_IN, OUT_CHANNELS, KERNEL_SIZES, STRIDES)

    # One-time parameter preparation (off the per-call path).
    ops32, pool32 = prepare_operators(params, L, dtype=jnp.float32)   # validation
    opsbf, poolbf = prepare_operators(params, L, dtype=jnp.bfloat16)  # production
    ops32 = jax.tree_util.tree_map(jax.block_until_ready, ops32)
    opsbf = jax.tree_util.tree_map(jax.block_until_ready, opsbf)

    fwd = jax.jit(encoder_forward, static_argnames=("tile_b",))
    ref = jax.block_until_ready(reference_forward(x, params))

    # f32 operators: exact-structure validation against the reference.
    out32 = jax.block_until_ready(fwd(x, ops32, pool32, tile_b=TILE_B))
    assert out32.shape == (B, OUT_CHANNELS, 1), out32.shape
    assert jnp.allclose(out32, ref, atol=1e-4, rtol=1e-4), (
        float(jnp.max(jnp.abs(out32 - ref))))

    # bf16 operators (production path): halved weight bytes, loosened check.
    out_bf = jax.block_until_ready(fwd(x, opsbf, poolbf, tile_b=TILE_B))
    assert out_bf.shape == (B, OUT_CHANNELS, 1), out_bf.shape
    assert jnp.allclose(out_bf, ref, atol=5e-2, rtol=5e-2), (
        float(jnp.max(jnp.abs(out_bf - ref))))

    print("KERNEL_OK")
</pallas_src>

<mosaic_0001>
module attributes {stable_mosaic.version = 11 : i64} {
  func.func @_encoder_fused_kernel(%arg0: i32, %arg1: memref<8x256xf32, #tpu.memory_space<vmem>>, %arg2: memref<256x256xf32, #tpu.memory_space<vmem>>, %arg3: memref<1x256xf32, #tpu.memory_space<vmem>>, %arg4: memref<256x256xf32, #tpu.memory_space<vmem>>, %arg5: memref<1x256xf32, #tpu.memory_space<vmem>>, %arg6: memref<256x256xf32, #tpu.memory_space<vmem>>, %arg7: memref<1x256xf32, #tpu.memory_space<vmem>>, %arg8: memref<256x32xf32, #tpu.memory_space<vmem>>, %arg9: memref<8x32xf32, #tpu.memory_space<vmem>>) attributes {dimension_semantics = [#tpu.dimension_semantics<parallel>], iteration_bounds = array<i64: 2>, scalar_prefetch = 0 : i64, scratch_operands = 0 : i64, tpu.core_type = #tpu.core_type<tc>, window_params = [{transform_indices = @transform_0, window_bounds = array<i64: 8, 256>}, {pipeline_mode = #tpu.pipeline_mode<synchronous>, transform_indices = @transform_1, window_bounds = array<i64: 256, 256>}, {pipeline_mode = #tpu.pipeline_mode<synchronous>, transform_indices = @transform_2, window_bounds = array<i64: 1, 256>}, {pipeline_mode = #tpu.pipeline_mode<synchronous>, transform_indices = @transform_3, window_bounds = array<i64: 256, 256>}, {pipeline_mode = #tpu.pipeline_mode<synchronous>, transform_indices = @transform_4, window_bounds = array<i64: 1, 256>}, {pipeline_mode = #tpu.pipeline_mode<synchronous>, transform_indices = @transform_5, window_bounds = array<i64: 256, 256>}, {pipeline_mode = #tpu.pipeline_mode<synchronous>, transform_indices = @transform_6, window_bounds = array<i64: 1, 256>}, {pipeline_mode = #tpu.pipeline_mode<synchronous>, transform_indices = @transform_7, window_bounds = array<i64: 256, 32>}, {transform_indices = @transform_8, window_bounds = array<i64: 8, 32>}]} {
    %c0 = arith.constant 0 : index
    %c0_0 = arith.constant 0 : index
    %0 = vector.load %arg1[%c0, %c0_0] : memref<8x256xf32, #tpu.memory_space<vmem>>, vector<8x256xf32>
    %c0_1 = arith.constant 0 : index
    %c0_2 = arith.constant 0 : index
    %1 = vector.load %arg2[%c0_1, %c0_2] : memref<256x256xf32, #tpu.memory_space<vmem>>, vector<256x256xf32>
    %c0_3 = arith.constant 0 : index
    %c0_4 = arith.constant 0 : index
    %2 = vector.load %arg3[%c0_3, %c0_4] : memref<1x256xf32, #tpu.memory_space<vmem>>, vector<1x256xf32>
    %cst = arith.constant dense<0.000000e+00> : vector<8x256xf32>
    %3 = tpu.matmul %0, %1, %cst {dimension_numbers = #tpu.dot_dimension_numbers<[1], [0], [0], [1], [0, 0, 1, 1], [], []>} : vector<8x256xf32>, vector<256x256xf32>, vector<8x256xf32> -> vector<8x256xf32>
    %4 = vector.broadcast %2 : vector<1x256xf32> to vector<8x256xf32>
    %5 = arith.addf %3, %4 : vector<8x256xf32>
    %cst_5 = arith.constant 0.000000e+00 : f32
    %6 = vector.broadcast %cst_5 : f32 to vector<8x256xf32>
    %7 = arith.maximumf %5, %6 : vector<8x256xf32>
    %c0_6 = arith.constant 0 : index
    %c0_7 = arith.constant 0 : index
    %8 = vector.load %arg4[%c0_6, %c0_7] : memref<256x256xf32, #tpu.memory_space<vmem>>, vector<256x256xf32>
    %c0_8 = arith.constant 0 : index
    %c0_9 = arith.constant 0 : index
    %9 = vector.load %arg5[%c0_8, %c0_9] : memref<1x256xf32, #tpu.memory_space<vmem>>, vector<1x256xf32>
    %cst_10 = arith.constant dense<0.000000e+00> : vector<8x256xf32>
    %10 = tpu.matmul %7, %8, %cst_10 {dimension_numbers = #tpu.dot_dimension_numbers<[1], [0], [0], [1], [0, 0, 1, 1], [], []>} : vector<8x256xf32>, vector<256x256xf32>, vector<8x256xf32> -> vector<8x256xf32>
    %11 = vector.broadcast %9 : vector<1x256xf32> to vector<8x256xf32>
    %12 = arith.addf %10, %11 : vector<8x256xf32>
    %cst_11 = arith.constant 0.000000e+00 : f32
    %13 = vector.broadcast %cst_11 : f32 to vector<8x256xf32>
    %14 = arith.maximumf %12, %13 : vector<8x256xf32>
    %c0_12 = arith.constant 0 : index
    %c0_13 = arith.constant 0 : index
    %15 = vector.load %arg6[%c0_12, %c0_13] : memref<256x256xf32, #tpu.memory_space<vmem>>, vector<256x256xf32>
    %c0_14 = arith.constant 0 : index
    %c0_15 = arith.constant 0 : index
    %16 = vector.load %arg7[%c0_14, %c0_15] : memref<1x256xf32, #tpu.memory_space<vmem>>, vector<1x256xf32>
    %cst_16 = arith.constant dense<0.000000e+00> : vector<8x256xf32>
    %17 = tpu.matmul %14, %15, %cst_16 {dimension_numbers = #tpu.dot_dimension_numbers<[1], [0], [0], [1], [0, 0, 1, 1], [], []>} : vector<8x256xf32>, vector<256x256xf32>, vector<8x256xf32> -> vector<8x256xf32>
    %18 = vector.broadcast %16 : vector<1x256xf32> to vector<8x256xf32>
    %19 = arith.addf %17, %18 : vector<8x256xf32>
    %cst_17 = arith.constant 0.000000e+00 : f32
    %20 = vector.broadcast %cst_17 : f32 to vector<8x256xf32>
    %21 = arith.maximumf %19, %20 : vector<8x256xf32>
    %c0_18 = arith.constant 0 : index
    %c0_19 = arith.constant 0 : index
    %22 = vector.load %arg8[%c0_18, %c0_19] : memref<256x32xf32, #tpu.memory_space<vmem>>, vector<256x32xf32>
    %cst_20 = arith.constant dense<0.000000e+00> : vector<8x32xf32>
    %23 = tpu.matmul %21, %22, %cst_20 {dimension_numbers = #tpu.dot_dimension_numbers<[1], [0], [0], [1], [0, 0, 1, 1], [], []>} : vector<8x256xf32>, vector<256x32xf32>, vector<8x32xf32> -> vector<8x32xf32>
    %c0_21 = arith.constant 0 : index
    %c0_22 = arith.constant 0 : index
    %24 = vector.load %arg9[%c0_21, %c0_22] : memref<8x32xf32, #tpu.memory_space<vmem>>, vector<8x32xf32>
    tpu.vector_store %arg9[%c0_21, %c0_22], %23 {strides = array<i32>} : memref<8x32xf32, #tpu.memory_space<vmem>>, vector<8x32xf32>,
    return
  }
  func.func @transform_0(%arg0: i32) -> (i32, i32) {
    %c0_i32 = arith.constant 0 : i32
    %c0_i32_0 = arith.constant 0 : i32
    return %arg0, %c0_i32 : i32, i32
  }
  func.func @transform_1(%arg0: i32) -> (i32, i32) {
    %c0_i32 = arith.constant 0 : i32
    %c0_i32_0 = arith.constant 0 : i32
    %c0_i32_1 = arith.constant 0 : i32
    return %c0_i32, %c0_i32_0 : i32, i32
  }
  func.func @transform_2(%arg0: i32) -> (i32, i32) {
    %c0_i32 = arith.constant 0 : i32
    %c0_i32_0 = arith.constant 0 : i32
    %c0_i32_1 = arith.constant 0 : i32
    return %c0_i32, %c0_i32_0 : i32, i32
  }
  func.func @transform_3(%arg0: i32) -> (i32, i32) {
    %c0_i32 = arith.constant 0 : i32
    %c0_i32_0 = arith.constant 0 : i32
    %c0_i32_1 = arith.constant 0 : i32
    return %c0_i32, %c0_i32_0 : i32, i32
  }
  func.func @transform_4(%arg0: i32) -> (i32, i32) {
    %c0_i32 = arith.constant 0 : i32
    %c0_i32_0 = arith.constant 0 : i32
    %c0_i32_1 = arith.constant 0 : i32
    return %c0_i32, %c0_i32_0 : i32, i32
  }
  func.func @transform_5(%arg0: i32) -> (i32, i32) {
    %c0_i32 = arith.constant 0 : i32
    %c0_i32_0 = arith.constant 0 : i32
    %c0_i32_1 = arith.constant 0 : i32
    return %c0_i32, %c0_i32_0 : i32, i32
  }
  func.func @transform_6(%arg0: i32) -> (i32, i32) {
    %c0_i32 = arith.constant 0 : i32
    %c0_i32_0 = arith.constant 0 : i32
    %c0_i32_1 = arith.constant 0 : i32
    return %c0_i32, %c0_i32_0 : i32, i32
  }
  func.func @transform_7(%arg0: i32) -> (i32, i32) {
    %c0_i32 = arith.constant 0 : i32
    %c0_i32_0 = arith.constant 0 : i32
    %c0_i32_1 = arith.constant 0 : i32
    return %c0_i32, %c0_i32_0 : i32, i32
  }
  func.func @transform_8(%arg0: i32) -> (i32, i32) {
    %c0_i32 = arith.constant 0 : i32
    %c0_i32_0 = arith.constant 0 : i32
    return %arg0, %c0_i32 : i32, i32
  }
}

</mosaic_0001>

<bundles_post_ra>
// kernel: encoder_forward.1
= control target key start
LH: loop header
LB: loop body
LE: loop exit
PB: predicated region body
PF: predicated region fallthrough
CT: control target
= control target key end

     0   :  { %13 = vsyncpa [#allocation3], 0  ;;  %s1889_s0 = inlined_call_operand.vmem [shape: f32[16,256], index: 0, kind: input, shape index: {}]   ;;  %s1890_s1 = inlined_call_operand.hbm [shape: f32[256,256], index: 1, kind: input, shape index: {}]   ;;  %s1891_s2 = inlined_call_operand.vmem [shape: f32[1,256], index: 2, kind: input, shape index: {}]   ;;  %s1892_s3 = inlined_call_operand.hbm [shape: f32[256,256], index: 3, kind: input, shape index: {}]   ;;  %s1893_s4 = inlined_call_operand.vmem [shape: f32[1,256], index: 4, kind: input, shape index: {}]   ;;  %s1894_s5 = inlined_call_operand.hbm [shape: f32[256,256], index: 5, kind: input, shape index: {}]   ;;  %s1895_s6 = inlined_call_operand.vmem [shape: f32[1,256], index: 6, kind: input, shape index: {}]   ;;  %s1896_s7 = inlined_call_operand.vmem [shape: f32[256,32], index: 7, kind: input, shape index: {}]   ;;  %s1897_s8 = inlined_call_operand.hbm [shape: f32[16,32], index: 8, kind: output, shape index: {}]  }
   0x1   :  { %14 = vsyncpa [#allocation6], 0 }
   0x2   :  { %15 = vsyncpa [#allocation4], 0 }
   0x3   :  { %17 = vsyncpa [#allocation4 + $0x1], 0  ;;  %s1561_s27 = smov 0   ;;  %s1563_s28 = smov 0  }
   0x4   :  { %s1565_s29 = smov 0   ;;  %s1567_s30 = smov 0  }
   0x5 LB: > { %1905 = sst [smem:[#allocation12_spill]] %s1504_s29  ;;  %s1582_s9 = sadd.s32 4294967295, %s1508_s30   ;;  %s1508_s30 = sphi %s1567_s30, %s1922_s30   ;;  %s1504_s29 = sphi %s1565_s29, %s1924_s29   ;;  %s1500_s28 = sphi %s1563_s28, %s1926_s28   ;;  %s1496_s27 = sphi %s1561_s27, %s1925_s27  }
   0x6   : > { %s1005_s10 = sadd.s32 4294967294, %s1508_s30   ;;  %s1586_s11 = sadd.s32 1, %s1508_s30  }
   0x7   : > { %1906 = sst [smem:[#allocation13_spill]] %s1586_s11  ;;  %s203_s12 = sadd.s32 1, %s1504_s29 }
   0x8   : > { %s200_s13 = ssub.s32 %s1508_s30, %s1586_s11  ;;  %p213_p0 = scmp.ne.s32.totalorder %s1504_s29, %s1500_s28 }
   0x9   : > { %p201_p1 = scmp.eq.s32.totalorder %s200_s13, 0  ;;  %p214_p2 = scmp.eq.s32.totalorder %s1582_s9, 1 }
   0xa   : > { %p219_p3 = scmp.ne.s32.totalorder %s1500_s28, %s1496_s27  ;;  %p220_p4 = scmp.eq.s32.totalorder %s1005_s10, 1 }
   0xb   : > { %s1597_s14 = scalar_select %p201_p1, %s1504_s29, %s203_s12  }
   0xc   : > { %p1599_p5 = por %p214_p2, %p213_p0  ;;  %p1603_p6 = por %p220_p4, %p219_p3 }
   0xd   : > { %1907 = sst [smem:[#allocation14_spill]] %s1597_s14  ;;  %p1006_p7 = scmp.ge.s32.totalorder %s1508_s30, 1 }
   0xe   : > { %s1908_s15 = scalar_select %p1599_p5, 1, 0 }
   0xf   : > { %s1909_s16 = scalar_select %p1603_p6, 1, 0 }
  0x10   : > { %p227_p8 = scmp.lt.s32.totalorder %s1508_s30, 3  ;;  %p1898_p9 = scmp.eq.s32.totalorder %s1582_s9, 0 }
  0x11   : > { %1910 = sst [smem:[#allocation15_spill]] %s1909_s16  ;;  %s1510_s18 = smov [#allocation5]  }
  0x12   : > { %p1610_p10 = pnand %p1006_p7, %p227_p8  ;;  %s255_s19 = sshll.u32 %s1510_s18, 4  ;;  %s1616_s19 = int_to_ptr.vmem [resolvable:$true] %s255_s19 }
  0x13   : > { %s1511_s21 = smov [#allocation2]   ;;  %s1512_s23 = smov [#allocation7]  }
  0x14   : > { %s1911_s17 = scalar_select %p1610_p10, 1, 0 }
  0x15   : > { %p1296_p11 = pneg %p1610_p10  ;;  %s239_s22 = sshll.u32 %s1511_s21, 4  ;;  %s1624_s22 = int_to_ptr.vmem [resolvable:$true] %s239_s22 }
  0x16   : > { %s1626_s24 = sshll.u32 %s1512_s23, 4  ;;  %s1354_s10 = scalar_lea.hbm %s1892_s3, 8192  ;;  %s272_s24 = int_to_ptr.vmem [resolvable:$true] %s1626_s24 }
  0x17   : > { %p1620_p12 = pnand %p1898_p9, %p1296_p11  ;;  %p1355_p13 = scmp.ne.s32.totalorder %s1892_s3, %s1354_s10 }
  0x18   : > { %p1361_p3 = scmp.lt.u32.totalorder %s1354_s10, %s1892_s3 }
  0x19   : > { %p1636_p0 = pneg %p1620_p12 }
  0x1b   : > { %p1357_p1 = pnand %p1636_p0, %p1355_p13 }
  0x1d   : > { %p1358_p2 = pneg %p1357_p1 }
  0x1f   : > { %p1363_p4 = pnand %p1361_p3, %p1358_p2 }
  0x21   : > { %1366 = shalt.err (!%p1363_p4)
}
  0x22   : > { %s1367_s25 = scalar_lea.vmem %s1616_s19, 8192  ;;  %p1375_p9 = scmp.lt.s32.totalorder %s1616_s19, %s1616_s19 }
  0x23   : > { %p1368_p7 = scmp.ne.s32.totalorder %s1616_s19, %s1367_s25  ;;  %p1376_p6 = scmp.lt.s32.totalorder %s1367_s25, %s1367_s25 }
  0x25   : > { %p1370_p8 = pnand %p1368_p7, %p1636_p0  ;;  %p1377_p13 = por %p1376_p6, %p1375_p9 }
  0x27   : > { %p1371_p11 = pneg %p1370_p8 }
  0x29   : > { %p1378_p1 = pnand %p1377_p13, %p1371_p11 }
  0x2b   : > { %1381 = shalt.err (!%p1378_p1)
}
  0x2c   : > { %s1513_s26 = smov 256   ;;  %s1514_s10 = smov 16  }
  0x2d   : > { %1302 = dma.hbm_to_vmem [thread:$0]  (!%p1620_p12), %s1892_s3, 8192, %s1616_s19, [#allocation6], %s1513_s26, %s1513_s26, %s1514_s10  }
  0x2e   : > { %s1382_s25 = scalar_lea.hbm %s1890_s1, 8192 }
  0x2f   : > { %p1383_p6 = scmp.ne.s32.totalorder %s1890_s1, %s1382_s25  ;;  %p1389_p3 = scmp.lt.u32.totalorder %s1382_s25, %s1890_s1 }
  0x31   : > { %p1385_p9 = pnand %p1383_p6, %p1636_p0 }
  0x33   : > { %p1386_p2 = pneg %p1385_p9 }
  0x35   : > { %p1391_p4 = pnand %p1389_p3, %p1386_p2 }
  0x37   : > { %1394 = shalt.err (!%p1391_p4)
}
  0x38   : > { %s1395_s19 = scalar_lea.vmem %s1624_s22, 8192  ;;  %p1403_p13 = scmp.lt.s32.totalorder %s1624_s22, %s1624_s22 }
  0x39   : > { %p1396_p7 = scmp.ne.s32.totalorder %s1624_s22, %s1395_s19  ;;  %p1404_p1 = scmp.lt.s32.totalorder %s1395_s19, %s1395_s19 }
  0x3b   : > { %p1398_p8 = pnand %p1396_p7, %p1636_p0  ;;  %p1405_p6 = por %p1404_p1, %p1403_p13 }
  0x3d   : > { %p1399_p11 = pneg %p1398_p8 }
  0x3f   : > { %p1406_p9 = pnand %p1405_p6, %p1399_p11 }
  0x41   : > { %1409 = shalt.err (!%p1406_p9)
}
  0x42   : > { %1299 = dma.hbm_to_vmem [thread:$0]  (!%p1620_p12), %s1890_s1, 8192, %s1624_s22, [#allocation3], %s1513_s26, %s1513_s26, %s1514_s10  }
  0x43   : > { %s1410_s12 = scalar_lea.hbm %s1894_s5, 8192 }
  0x44   : > { %p1411_p2 = scmp.ne.s32.totalorder %s1894_s5, %s1410_s12  ;;  %p1417_p7 = scmp.lt.u32.totalorder %s1410_s12, %s1894_s5 }
  0x46   : > { %p1413_p3 = pnand %p1411_p2, %p1636_p0 }
  0x48   : > { %p1414_p4 = pneg %p1413_p3 }
  0x4a   : > { %p1419_p8 = pnand %p1417_p7, %p1414_p4 }
  0x4c   : > { %1422 = shalt.err (!%p1419_p8)
}
  0x4d   : > { %s1423_s19 = scalar_lea.vmem %s272_s24, 8192  ;;  %p1431_p6 = scmp.lt.s32.totalorder %s272_s24, %s272_s24 }
  0x4e   : > { %p1424_p11 = scmp.ne.s32.totalorder %s272_s24, %s1423_s19  ;;  %p1432_p9 = scmp.lt.s32.totalorder %s1423_s19, %s1423_s19 }
  0x50   : > { %p1426_p13 = pnand %p1424_p11, %p1636_p0  ;;  %p1433_p5 = por %p1432_p9, %p1431_p6 }
  0x52   : > { %p1427_p1 = pneg %p1426_p13 }
  0x54   : > { %p1434_p10 = pnand %p1433_p5, %p1427_p1 }
  0x56   : > { %1437 = shalt.err (!%p1434_p10)
}
  0x57   : > { %1305 = dma.hbm_to_vmem [thread:$0]  (!%p1620_p12), %s1894_s5, 8192, %s272_s24, [#allocation6], %s1513_s26, %s1513_s26, %s1514_s10  }
  0x58   : > { %p1914_p2 = scmp.ne.s32.totalorder %s1911_s17, 0 }
  0x59   : > { %p1915_p0 = scmp.eq.s32.totalorder (!%p1914_p2), %s1582_s9, 0 }
  0x5a   : > { %301 = sbr.rel (%p1914_p2) target bundleno = 1051 (0x41b), region = 52 }
  0x61   : > { %1483 = dma.done.wait (%p1915_p0), [#allocation3], 8192   ;;  %p1916_p3 = pmov %p1915_p0 }
  0x62   : > { %p1917_p5 = pmov %p1915_p0 }
  0x63   : > { %1485 = vsyncadd (%p1916_p3), [#allocation3], 4294959104 }
  0x64   : > { %1487 = dma.done.wait (%p1917_p5), [#allocation6], 16384   ;;  %p1918_p10 = pmov %p1915_p0 }
  0x65   : > { %v351_v0 = vld [vmem:[#allocation2 + $0x8] sm:$0xff]  ;;  %v353_v1 = vld [vmem:[#allocation2 + $0x18] sm:$0xff]  ;;  %v350_v2 = vld [vmem:[#allocation2] sm:$0xff]  ;;  %p343_p12 = scmp.lt.s32.totalorder %s1582_s9, 1  ;;  %s340_s14 = sand.u32 1, %s1500_s28   ;;  %vm899_vm0 = vcmask 261120  }
  0x66   : > { %1489 = vsyncadd (%p1918_p10), [#allocation6], 4294950912  ;;  %v1058_v3 = vpack.c.bf16 %v353_v1, %v351_v0  ;;  %v352_v4 = vld [vmem:[#allocation2 + $0x10] sm:$0xff]  ;;  %v355_v5 = vld [vmem:[#allocation2 + $0x28] sm:$0xff]  ;;  %s1015_s16 = sshll.u32 %s340_s14, 3  ;;  %s1019_s12 = sshll.u32 %s1582_s9, 7 }
  0x67   : > { %v357_v6 = vld [vmem:[#allocation2 + $0x38] sm:$0xff]  ;;  %v1060_v7 = vpack.c.bf16 %v352_v4, %v350_v2  ;;  %v354_v9 = vld [vmem:[#allocation2 + $0x20] sm:$0xff]  ;;  %v356_v10 = vld [vmem:[#allocation2 + $0x30] sm:$0xff]  ;;  %s344_s17 = scalar_select %p343_p12, %s1582_s9, 1 }
  0x68   : > { %v1062_v8 = vpack.c.bf16 %v357_v6, %v355_v5  ;;  %v359_v11 = vld [vmem:[#allocation2 + $0x48] sm:$0xff]  ;;  %1059 = vmatprep.subr.bf16.mxu0 %v1058_v3  ;;  %v361_v12 = vld [vmem:[#allocation2 + $0x58] sm:$0xff]  ;;  %v1064_v13 = vpack.c.bf16 %v356_v10, %v354_v9  ;;  %v358_v15 = vld [vmem:[#allocation2 + $0x40] sm:$0xff]  ;;  %s342_s13 = scalar_lea.vmem [#allocation8], %s1015_s16  ;;  %s1847_s19 = scalar_lea.hbm %s1897_s8, %s1019_s12 }
  0x69   : > { %1061 = vmatpush1.bf16.msra.mxu0 %v1060_v7  ;;  %v1066_v14 = vpack.c.bf16 %v361_v12, %v359_v11  ;;  %v360_v16 = vld [vmem:[#allocation2 + $0x50] sm:$0xff]  ;;  %v363_v17 = vld [vmem:[#allocation2 + $0x68] sm:$0xff]  ;;  %v365_v18 = vld [vmem:[#allocation2 + $0x78] sm:$0xff]  ;;  %s1022_s20 = sshll.u32 %s344_s17, 4  ;;  %s915_s21 = sshll.u32 %s342_s13, 4  ;;  %s1849_s21 = int_to_ptr.vmem [resolvable:$true] %s915_s21 }
  0x6a   : > { %1063 = vmatprep.subr.bf16.mxu0 %v1062_v8  ;;  %v1068_v19 = vpack.c.bf16 %v360_v16, %v358_v15  ;;  %v1070_v20 = vpack.c.bf16 %v365_v18, %v363_v17  ;;  %v362_v21 = vld [vmem:[#allocation2 + $0x60] sm:$0xff]  ;;  %v364_v22 = vld [vmem:[#allocation2 + $0x70] sm:$0xff]  ;;  %v367_v23 = vld [vmem:[#allocation2 + $0x88] sm:$0xff]  ;;  %s1723_s26 = scalar_lea.vmem %s1889_s0, %s1022_s20  ;;  %s902_s22 = scalar_lea.sflag [#allocation4], %s340_s14 }
  0x6b   : > { %v369_v24 = vld [vmem:[#allocation2 + $0x98] sm:$0xff]  ;;  %v1072_v25 = vpack.c.bf16 %v364_v22, %v362_v21  ;;  %v366_v27 = vld [vmem:[#allocation2 + $0x80] sm:$0xff]  ;;  %v368_v28 = vld [vmem:[#allocation2 + $0x90] sm:$0xff]  ;;  %s1438_s29 = scalar_lea.vmem %s1849_s21, 128  ;;  %p1919_p7 = scmp.ne.s32.totalorder %s1908_s15, 0 }
  0x6c   : > { %v1074_v26 = vpack.c.bf16 %v369_v24, %v367_v23  ;;  %v371_v29 = vld [vmem:[#allocation2 + $0xa8] sm:$0xff]  ;;  %v373_v30 = vld [vmem:[#allocation2 + $0xb8] sm:$0xff]  ;;  %v1076_v31 = vpack.c.bf16 %v368_v28, %v366_v27  ;;  %v370_v33 = vld [vmem:[#allocation2 + $0xa0] sm:$0xff]  ;;  %p1439_p4 = scmp.ne.s32.totalorder %s1849_s21, %s1438_s29  ;;  %s1515_s9 = smov [#allocation8]  }
  0x6d   : > { %1065 = vmatpush1.bf16.msra.mxu0 %v1064_v13  ;;  %v1078_v32 = vpack.c.bf16 %v373_v30, %v371_v29  ;;  %v372_v34 = vld [vmem:[#allocation2 + $0xb0] sm:$0xff]  ;;  %v375_v35 = vld [vmem:[#allocation2 + $0xc8] sm:$0xff]  ;;  %v377_v36 = vld [vmem:[#allocation2 + $0xd8] sm:$0xff]  ;;  %s1442_s17 = sshll.u32 %s1515_s9, 4  ;;  %s1443_s17 = int_to_ptr.vmem [resolvable:$false] %s1442_s17 }
  0x6e   : > { %1067 = vmatprep.subr.bf16.mxu0 %v1066_v14  ;;  %v1080_v37 = vpack.c.bf16 %v372_v34, %v370_v33  ;;  %v374_v38 = vld [vmem:[#allocation2 + $0xc0] sm:$0xff]  ;;  %v376_v39 = vld [vmem:[#allocation2 + $0xd0] sm:$0xff]  ;;  %v1082_v40 = vpack.c.bf16 %v377_v36, %v375_v35  ;;  %v379_v41 = vld [vmem:[#allocation2 + $0xe8] sm:$0xff]  ;;  %p1440_p8 = pnand %p1439_p4, %p1919_p7  ;;  %s1444_s20 = scalar_lea.vmem %s1443_s17, 256 }
  0x6f   : > { %v381_v42 = vld [vmem:[#allocation2 + $0xf8] sm:$0xff]  ;;  %v349_v43 = vld [vmem:[%s1723_s26 + $0x8] sm:$0xff]  ;;  %v499_v46 = vld [vmem:[#allocation5] sm:$0xff]  ;;  %v1084_v51 = vpack.c.bf16 %v376_v39, %v374_v38  ;;  %p1445_p13 = scmp.lt.s32.totalorder %s1849_s21, %s1443_s17  ;;  %p1446_p1 = scmp.lt.s32.totalorder %s1444_s20, %s1438_s29 }
  0x70   : > { %490 = vmatprep.mubr.f32.mxu0 %v349_v43  ;;  %v500_v44 = vld [vmem:[#allocation5 + $0x8] sm:$0xff]  ;;  %v502_v45 = vld [vmem:[#allocation5 + $0x18] sm:$0xff]  ;;  %v501_v48 = vld [vmem:[#allocation5 + $0x10] sm:$0xff]  ;;  %v1086_v57 = vpack.c.bf16 %v381_v42, %v379_v41  ;;  %p1441_p11 = pneg %p1440_p8 }
  0x71   : > { %1069 = vmatpush1.bf16.msra.mxu0 %v1068_v19  ;;  %v1122_v47 = vpack.c.bf16 %v502_v45, %v500_v44  ;;  %v504_v49 = vld [vmem:[#allocation5 + $0x28] sm:$0xff]  ;;  %v506_v50 = vld [vmem:[#allocation5 + $0x38] sm:$0xff]  ;;  %v1124_v52 = vpack.c.bf16 %v501_v48, %v499_v46  ;;  %v503_v54 = vld [vmem:[#allocation5 + $0x20] sm:$0xff]  ;;  %p1447_p6 = por %p1446_p1, %p1445_p13 }
  0x72   : > { %1071 = vmatprep.subr.bf16.mxu0 %v1070_v20  ;;  %v1126_v53 = vpack.c.bf16 %v506_v50, %v504_v49  ;;  %v505_v55 = vld [vmem:[#allocation5 + $0x30] sm:$0xff]  ;;  %v508_v56 = vld [vmem:[#allocation5 + $0x48] sm:$0xff]  ;;  %v378_v58 = vld [vmem:[#allocation2 + $0xe0] sm:$0xff] }
  0x73   : > { %v380_v59 = vld [vmem:[#allocation2 + $0xf0] sm:$0xff]  ;;  %1123 = vmatprep.subr.bf16.mxu1 %v1122_v47  ;;  %v510_v60 = vld [vmem:[#allocation5 + $0x58] sm:$0xff]  ;;  %v383_v61 = vld [vmem:[#allocation2 + $0x108] sm:$0xff]  ;;  %v1128_v63 = vpack.c.bf16 %v505_v55, %v503_v54  ;;  %p1448_p9 = pnand %p1447_p6, %p1441_p11 }
  0x74   : > { %v385_v62 = vld [vmem:[#allocation2 + $0x118] sm:$0xff]  ;;  %1125 = vmatpush1.bf16.msra.mxu1 %v1124_v52  ;;  %v1130_v0 = vpack.c.bf16 %v510_v60, %v508_v56  ;;  %v507_v1 = vld [vmem:[#allocation5 + $0x40] sm:$0xff]  ;;  %v509_v2 = vld [vmem:[#allocation5 + $0x50] sm:$0xff]  ;;  %v1088_v3 = vpack.c.bf16 %v380_v59, %v378_v58 }
  0x75   : > { %1073 = vmatpush1.bf16.msra.mxu0 %v1072_v25  ;;  %1127 = vmatprep.subr.bf16.mxu1 %v1126_v53  ;;  %v512_v4 = vld [vmem:[#allocation5 + $0x68] sm:$0xff]  ;;  %v514_v5 = vld [vmem:[#allocation5 + $0x78] sm:$0xff]  ;;  %v1090_v6 = vpack.c.bf16 %v385_v62, %v383_v61  ;;  %v382_v7 = vld [vmem:[#allocation2 + $0x100] sm:$0xff]  ;;  %v1132_v11 = vpack.c.bf16 %v509_v2, %v507_v1 }
  0x76   : > { %1075 = vmatprep.subr.bf16.mxu0 %v1074_v26  ;;  %v384_v8 = vld [vmem:[#allocation2 + $0x110] sm:$0xff]  ;;  %v387_v9 = vld [vmem:[#allocation2 + $0x128] sm:$0xff]  ;;  %v389_v10 = vld [vmem:[#allocation2 + $0x138] sm:$0xff]  ;;  %v1134_v12 = vpack.c.bf16 %v514_v5, %v512_v4 }
  0x77   : > { %v511_v13 = vld [vmem:[#allocation5 + $0x60] sm:$0xff]  ;;  %v513_v14 = vld [vmem:[#allocation5 + $0x70] sm:$0xff]  ;;  %v1092_v15 = vpack.c.bf16 %v384_v8, %v382_v7  ;;  %v516_v16 = vld [vmem:[#allocation5 + $0x88] sm:$0xff]  ;;  %v1094_v18 = vpack.c.bf16 %v389_v10, %v387_v9 }
  0x78   : > { %1129 = vmatpush1.bf16.msra.mxu1 %v1128_v63  ;;  %v518_v17 = vld [vmem:[#allocation5 + $0x98] sm:$0xff]  ;;  %v386_v19 = vld [vmem:[#allocation2 + $0x120] sm:$0xff]  ;;  %v388_v20 = vld [vmem:[#allocation2 + $0x130] sm:$0xff]  ;;  %v1136_v23 = vpack.c.bf16 %v513_v14, %v511_v13 }
  0x79   : > { %1077 = vmatpush1.bf16.msra.mxu0 %v1076_v31  ;;  %1131 = vmatprep.subr.bf16.mxu1 %v1130_v0  ;;  %v391_v21 = vld [vmem:[#allocation2 + $0x148] sm:$0xff]  ;;  %v393_v22 = vld [vmem:[#allocation2 + $0x158] sm:$0xff]  ;;  %v1138_v24 = vpack.c.bf16 %v518_v17, %v516_v16  ;;  %v515_v25 = vld [vmem:[#allocation5 + $0x80] sm:$0xff]  ;;  %v1096_v27 = vpack.c.bf16 %v388_v20, %v386_v19 }
  0x7a   : > { %1079 = vmatprep.subr.bf16.mxu0 %v1078_v32  ;;  %v517_v26 = vld [vmem:[#allocation5 + $0x90] sm:$0xff]  ;;  %v520_v28 = vld [vmem:[#allocation5 + $0xa8] sm:$0xff]  ;;  %v522_v29 = vld [vmem:[#allocation5 + $0xb8] sm:$0xff]  ;;  %v1098_v30 = vpack.c.bf16 %v393_v22, %v391_v21 }
  0x7b   : > { %v390_v31 = vld [vmem:[#allocation2 + $0x140] sm:$0xff]  ;;  %v392_v32 = vld [vmem:[#allocation2 + $0x150] sm:$0xff]  ;;  %v395_v33 = vld [vmem:[#allocation2 + $0x168] sm:$0xff]  ;;  %v1140_v35 = vpack.c.bf16 %v517_v26, %v515_v25  ;;  %v1142_v36 = vpack.c.bf16 %v522_v29, %v520_v28 }
  0x7c   : > { %1133 = vmatpush1.bf16.msra.mxu1 %v1132_v11  ;;  %v397_v34 = vld [vmem:[#allocation2 + $0x178] sm:$0xff]  ;;  %v521_v38 = vld [vmem:[#allocation5 + $0xb0] sm:$0xff]  ;;  %v1100_v39 = vpack.c.bf16 %v392_v32, %v390_v31  ;;  %v394_v43 = vld [vmem:[#allocation2 + $0x160] sm:$0xff] }
  0x7d   : > { %1081 = vmatpush1.bf16.msra.mxu0 %v1080_v37  ;;  %1135 = vmatprep.subr.bf16.mxu1 %v1134_v12  ;;  %v519_v37 = vld [vmem:[#allocation5 + $0xa0] sm:$0xff]  ;;  %v526_v41 = vld [vmem:[#allocation5 + $0xd8] sm:$0xff]  ;;  %v1102_v42 = vpack.c.bf16 %v397_v34, %v395_v33  ;;  %v396_v44 = vld [vmem:[#allocation2 + $0x170] sm:$0xff] }
  0x7e   : > { %1083 = vmatprep.subr.bf16.mxu0 %v1082_v40  ;;  %v524_v40 = vld [vmem:[#allocation5 + $0xc8] sm:$0xff]  ;;  %v401_v46 = vld [vmem:[#allocation2 + $0x198] sm:$0xff]  ;;  %v1144_v47 = vpack.c.bf16 %v521_v38, %v519_v37  ;;  %v523_v49 = vld [vmem:[#allocation5 + $0xc0] sm:$0xff] }
  0x7f   : > { %v399_v45 = vld [vmem:[#allocation2 + $0x188] sm:$0xff]  ;;  %v1146_v48 = vpack.c.bf16 %v526_v41, %v524_v40  ;;  %v525_v50 = vld [vmem:[#allocation5 + $0xd0] sm:$0xff]  ;;  %v530_v53 = vld [vmem:[#allocation5 + $0xf8] sm:$0xff] }
  0x80   : > { %1137 = vmatpush1.bf16.msra.mxu1 %v1136_v23  ;;  %v528_v52 = vld [vmem:[#allocation5 + $0xe8] sm:$0xff]  ;;  %v1106_v54 = vpack.c.bf16 %v401_v46, %v399_v45  ;;  %v398_v55 = vld [vmem:[#allocation2 + $0x180] sm:$0xff]  ;;  %v400_v56 = vld [vmem:[#allocation2 + $0x190] sm:$0xff]  ;;  %v1148_v59 = vpack.c.bf16 %v525_v50, %v523_v49 }
  0x81   : > { %1085 = vmatpush1.bf16.msra.mxu0 %v1084_v51  ;;  %1139 = vmatprep.subr.bf16.mxu1 %v1138_v24  ;;  %v1104_v51 = vpack.c.bf16 %v396_v44, %v394_v43  ;;  %v405_v58 = vld [vmem:[#allocation2 + $0x1b8] sm:$0xff]  ;;  %v1150_v60 = vpack.c.bf16 %v530_v53, %v528_v52  ;;  %v527_v61 = vld [vmem:[#allocation5 + $0xe0] sm:$0xff]  ;;  %v529_v62 = vld [vmem:[#allocation5 + $0xf0] sm:$0xff]  ;;  %v1108_v63 = vpack.c.bf16 %v400_v56, %v398_v55 }
  0x82   : > { %1087 = vmatprep.subr.bf16.mxu0 %v1086_v57  ;;  %v403_v57 = vld [vmem:[#allocation2 + $0x1a8] sm:$0xff]  ;;  %v534_v1 = vld [vmem:[#allocation5 + $0x118] sm:$0xff]  ;;  %v404_v4 = vld [vmem:[#allocation2 + $0x1b0] sm:$0xff]  ;;  %v1152_v7 = vpack.c.bf16 %v529_v62, %v527_v61 }
  0x83   : > { %v532_v0 = vld [vmem:[#allocation5 + $0x108] sm:$0xff]  ;;  %v1110_v2 = vpack.c.bf16 %v405_v58, %v403_v57  ;;  %v531_v9 = vld [vmem:[#allocation5 + $0x100] sm:$0xff]  ;;  %v533_v10 = vld [vmem:[#allocation5 + $0x110] sm:$0xff] }
  0x84   : > { %1141 = vmatpush1.bf16.msra.mxu1 %v1140_v35  ;;  %v407_v5 = vld [vmem:[#allocation2 + $0x1c8] sm:$0xff]  ;;  %v1154_v8 = vpack.c.bf16 %v534_v1, %v532_v0  ;;  %v538_v13 = vld [vmem:[#allocation5 + $0x138] sm:$0xff]  ;;  %v408_v16 = vld [vmem:[#allocation2 + $0x1d0] sm:$0xff]  ;;  %v1156_v19 = vpack.c.bf16 %v533_v10, %v531_v9 }
  0x85   : > { %1089 = vmatpush1.bf16.msra.mxu0 %v1088_v3  ;;  %1143 = vmatprep.subr.bf16.mxu1 %v1142_v36  ;;  %v402_v3 = vld [vmem:[#allocation2 + $0x1a0] sm:$0xff]  ;;  %v536_v12 = vld [vmem:[#allocation5 + $0x128] sm:$0xff]  ;;  %v537_v22 = vld [vmem:[#allocation5 + $0x130] sm:$0xff] }
  0x86   : > { %1091 = vmatprep.subr.bf16.mxu0 %v1090_v6  ;;  %v409_v6 = vld [vmem:[#allocation2 + $0x1d8] sm:$0xff]  ;;  %v1112_v11 = vpack.c.bf16 %v404_v4, %v402_v3  ;;  %v411_v17 = vld [vmem:[#allocation2 + $0x1e8] sm:$0xff]  ;;  %v1158_v20 = vpack.c.bf16 %v538_v13, %v536_v12  ;;  %v535_v21 = vld [vmem:[#allocation5 + $0x120] sm:$0xff] }
  0x87   : > { %v1114_v14 = vpack.c.bf16 %v409_v6, %v407_v5  ;;  %v540_v24 = vld [vmem:[#allocation5 + $0x148] sm:$0xff]  ;;  %v542_v25 = vld [vmem:[#allocation5 + $0x158] sm:$0xff]  ;;  %v412_v28 = vld [vmem:[#allocation2 + $0x1f0] sm:$0xff]  ;;  %v1160_v29 = vpack.c.bf16 %v537_v22, %v535_v21 }
  0x88   : > { %1145 = vmatpush1.bf16.msra.mxu1 %v1144_v47  ;;  %v539_v31 = vld [vmem:[#allocation5 + $0x140] sm:$0xff]  ;;  %v541_v32 = vld [vmem:[#allocation5 + $0x150] sm:$0xff]  ;;  %v544_v34 = vld [vmem:[#allocation5 + $0x168] sm:$0xff] }
  0x89   : > { %1093 = vmatpush1.bf16.msra.mxu0 %v1092_v15  ;;  %1147 = vmatprep.subr.bf16.mxu1 %v1146_v48  ;;  %v406_v15 = vld [vmem:[#allocation2 + $0x1c0] sm:$0xff]  ;;  %v546_v35 = vld [vmem:[#allocation5 + $0x178] sm:$0xff]  ;;  %v1164_v36 = vpack.c.bf16 %v541_v32, %v539_v31  ;;  %v548_v41 = vld [vmem:[#allocation5 + $0x188] sm:$0xff] }
  0x8a   : > { %1095 = vmatprep.subr.bf16.mxu0 %v1094_v18  ;;  %v413_v18 = vld [vmem:[#allocation2 + $0x1f8] sm:$0xff]  ;;  %v1116_v23 = vpack.c.bf16 %v408_v16, %v406_v15  ;;  %v1166_v37 = vpack.c.bf16 %v546_v35, %v544_v34  ;;  %v543_v38 = vld [vmem:[#allocation5 + $0x160] sm:$0xff]  ;;  %v549_v46 = vld [vmem:[#allocation5 + $0x190] sm:$0xff] }
  0x8b   : > { %v1118_v26 = vpack.c.bf16 %v413_v18, %v411_v17  ;;  %v348_v40 = vld [vmem:[%s1723_s26] sm:$0xff]  ;;  %v552_v47 = vld [vmem:[#allocation5 + $0x1a8] sm:$0xff]  ;;  %v554_v48 = vld [vmem:[#allocation5 + $0x1b8] sm:$0xff] }
  0x8c   : > { %1149 = vmatpush1.bf16.msra.mxu1 %v1148_v59  ;;  %v547_v45 = vld [vmem:[#allocation5 + $0x180] sm:$0xff]  ;;  %v1174_v50 = vpack.c.bf16 %v554_v48, %v552_v47  ;;  %v553_v52 = vld [vmem:[#allocation5 + $0x1b0] sm:$0xff]  ;;  %v556_v53 = vld [vmem:[#allocation5 + $0x1c8] sm:$0xff] }
  0x8d   : > { %1097 = vmatpush1.bf16.msra.mxu0 %v1096_v27  ;;  %1151 = vmatprep.subr.bf16.mxu1 %v1150_v60  ;;  %v410_v27 = vld [vmem:[#allocation2 + $0x1e0] sm:$0xff]  ;;  %v1172_v49 = vpack.c.bf16 %v549_v46, %v547_v45  ;;  %v557_v58 = vld [vmem:[#allocation5 + $0x1d0] sm:$0xff]  ;;  %v560_v60 = vld [vmem:[#allocation5 + $0x1e8] sm:$0xff] }
  0x8e   : > { %1099 = vmatprep.subr.bf16.mxu0 %v1098_v30  ;;  %v1162_v30 = vpack.c.bf16 %v542_v25, %v540_v24  ;;  %v1120_v33 = vpack.c.bf16 %v412_v28, %v410_v27  ;;  %v555_v57 = vld [vmem:[#allocation5 + $0x1c0] sm:$0xff]  ;;  %v562_v61 = vld [vmem:[#allocation5 + $0x1f8] sm:$0xff]  ;;  %v561_v0 = vld [vmem:[#allocation5 + $0x1f0] sm:$0xff] }
  0x8f   : > { %v1180_v59 = vpack.c.bf16 %v557_v58, %v555_v57  ;;  %v1182_v62 = vpack.c.bf16 %v562_v61, %v560_v60  ;;  %v651_v3 = vld [vmem:[#allocation7 + $0x18] sm:$0xff]  ;;  %v648_v4 = vld [vmem:[#allocation7] sm:$0xff]  ;;  %v650_v6 = vld [vmem:[#allocation7 + $0x10] sm:$0xff] }
  0x90   : > { %1153 = vmatpush1.bf16.msra.mxu1 %v1152_v7  ;;  %v653_v7 = vld [vmem:[#allocation7 + $0x28] sm:$0xff]  ;;  %v1188_v9 = vpack.c.bf16 %v650_v6, %v648_v4  ;;  %v654_v12 = vld [vmem:[#allocation7 + $0x30] sm:$0xff]  ;;  %v656_v17 = vld [vmem:[#allocation7 + $0x40] sm:$0xff] }
  0x91   : > { %1101 = vmatpush1.bf16.msra.mxu0 %v1100_v39  ;;  %1155 = vmatprep.subr.bf16.mxu1 %v1154_v8  ;;  %v545_v39 = vld [vmem:[#allocation5 + $0x170] sm:$0xff]  ;;  %v655_v8 = vld [vmem:[#allocation7 + $0x38] sm:$0xff]  ;;  %v657_v13 = vld [vmem:[#allocation7 + $0x48] sm:$0xff] }
  0x92   : > { %1103 = vmatprep.subr.bf16.mxu0 %v1102_v42  ;;  %v550_v42 = vld [vmem:[#allocation5 + $0x198] sm:$0xff]  ;;  %v1168_v43 = vpack.c.bf16 %v545_v39, %v543_v38  ;;  %v1190_v10 = vpack.c.bf16 %v655_v8, %v653_v7  ;;  %v658_v18 = vld [vmem:[#allocation7 + $0x50] sm:$0xff]  ;;  %v665_v25 = vld [vmem:[#allocation7 + $0x88] sm:$0xff] }
  0x93   : > { %v1170_v44 = vpack.c.bf16 %v550_v42, %v548_v41  ;;  %v1196_v21 = vpack.c.bf16 %v658_v18, %v656_v17  ;;  %v662_v24 = vld [vmem:[#allocation7 + $0x70] sm:$0xff]  ;;  %v669_v31 = vld [vmem:[#allocation7 + $0xa8] sm:$0xff]  ;;  %v671_v32 = vld [vmem:[#allocation7 + $0xb8] sm:$0xff] }
  0x94   : > { %1157 = vmatpush1.bf16.msra.mxu1 %v1156_v19  ;;  %v661_v19 = vld [vmem:[#allocation7 + $0x68] sm:$0xff]  ;;  %v1206_v34 = vpack.c.bf16 %v671_v32, %v669_v31  ;;  %v668_v35 = vld [vmem:[#allocation7 + $0xa0] sm:$0xff]  ;;  %v675_v38 = vld [vmem:[#allocation7 + $0xd8] sm:$0xff] }
  0x95   : > { %1105 = vmatpush1.bf16.msra.mxu0 %v1104_v51  ;;  %1159 = vmatprep.subr.bf16.mxu1 %v1158_v20  ;;  %v551_v51 = vld [vmem:[#allocation5 + $0x1a0] sm:$0xff]  ;;  %v663_v20 = vld [vmem:[#allocation7 + $0x78] sm:$0xff]  ;;  %v674_v42 = vld [vmem:[#allocation7 + $0xd0] sm:$0xff] }
  0x96   : > { %1107 = vmatprep.subr.bf16.mxu0 %v1106_v54  ;;  %v558_v54 = vld [vmem:[#allocation5 + $0x1d8] sm:$0xff]  ;;  %v1176_v55 = vpack.c.bf16 %v553_v52, %v551_v51  ;;  %v1198_v22 = vpack.c.bf16 %v663_v20, %v661_v19  ;;  %v672_v41 = vld [vmem:[#allocation7 + $0xc0] sm:$0xff]  ;;  %v678_v48 = vld [vmem:[#allocation7 + $0xf0] sm:$0xff] }
  0x97   : > { %v1178_v56 = vpack.c.bf16 %v558_v54, %v556_v53  ;;  %v1212_v45 = vpack.c.bf16 %v674_v42, %v672_v41  ;;  %v676_v47 = vld [vmem:[#allocation7 + $0xe0] sm:$0xff]  ;;  %v682_v54 = vld [vmem:[#allocation7 + $0x110] sm:$0xff]  ;;  %v689_v61 = vld [vmem:[#allocation7 + $0x148] sm:$0xff] }
  0x98   : > { %1161 = vmatpush1.bf16.msra.mxu1 %v1160_v29  ;;  %v664_v29 = vld [vmem:[#allocation7 + $0x80] sm:$0xff]  ;;  %v1216_v51 = vpack.c.bf16 %v678_v48, %v676_v47  ;;  %v686_v60 = vld [vmem:[#allocation7 + $0x130] sm:$0xff]  ;;  %v695_v4 = vld [vmem:[#allocation7 + $0x178] sm:$0xff] }
  0x99   : > { %1109 = vmatpush1.bf16.msra.mxu0 %v1108_v63  ;;  %1163 = vmatprep.subr.bf16.mxu1 %v1162_v30  ;;  %v559_v63 = vld [vmem:[#allocation5 + $0x1e0] sm:$0xff]  ;;  %v666_v30 = vld [vmem:[#allocation7 + $0x90] sm:$0xff]  ;;  %v709_v41 = vld [vmem:[#allocation7 + $0x1e8] sm:$0xff] }
  0x9a   : > { %1111 = vmatprep.subr.bf16.mxu0 %v1110_v2  ;;  %v1184_v1 = vpack.c.bf16 %v561_v0, %v559_v63  ;;  %v649_v2 = vld [vmem:[#allocation7 + $0x8] sm:$0xff]  ;;  %v680_v53 = vld [vmem:[#allocation7 + $0x100] sm:$0xff]  ;;  %v694_v8 = vld [vmem:[#allocation7 + $0x170] sm:$0xff] }
  0x9b   : > { %v1186_v5 = vpack.c.bf16 %v651_v3, %v649_v2  ;;  %v1220_v57 = vpack.c.bf16 %v682_v54, %v680_v53  ;;  %v690_v2 = vld [vmem:[#allocation7 + $0x150] sm:$0xff]  ;;  %v693_v3 = vld [vmem:[#allocation7 + $0x168] sm:$0xff]  ;;  %v692_v7 = vld [vmem:[#allocation7 + $0x160] sm:$0xff] }
  0x9c   : > { %1165 = vmatpush1.bf16.msra.mxu1 %v1164_v36  ;;  %v670_v36 = vld [vmem:[#allocation7 + $0xb0] sm:$0xff]  ;;  %v1230_v6 = vpack.c.bf16 %v695_v4, %v693_v3  ;;  %v700_v19 = vld [vmem:[#allocation7 + $0x1a0] sm:$0xff]  ;;  %v711_v42 = vld [vmem:[#allocation7 + $0x1f8] sm:$0xff] }
  0x9d   : > { %1113 = vmatpush1.bf16.msra.mxu0 %v1112_v11  ;;  %1167 = vmatprep.subr.bf16.mxu1 %v1166_v37  ;;  %v652_v11 = vld [vmem:[#allocation7 + $0x20] sm:$0xff]  ;;  %v673_v37 = vld [vmem:[#allocation7 + $0xc8] sm:$0xff]  ;;  %v1208_v39 = vpack.c.bf16 %v670_v36, %v668_v35  ;;  %v702_v20 = vld [vmem:[#allocation7 + $0x1b0] sm:$0xff] }
  0x9e   : > { %1115 = vmatprep.subr.bf16.mxu0 %v1114_v14  ;;  %v659_v14 = vld [vmem:[#allocation7 + $0x58] sm:$0xff]  ;;  %v1192_v15 = vpack.c.bf16 %v654_v12, %v652_v11  ;;  %v1232_v11 = vpack.c.bf16 %v694_v8, %v692_v7  ;;  %v813_v47 = vld [vmem:[%s1896_s7 + $0x80] sm:$0xff]  ;;  %v814_v48 = vld [vmem:[%s1896_s7 + $0x88] sm:$0xff] }
  0x9f   : > { %v1194_v16 = vpack.c.bf16 %v659_v14, %v657_v13  ;;  %v696_v13 = vld [vmem:[#allocation7 + $0x180] sm:$0xff]  ;;  %v698_v14 = vld [vmem:[#allocation7 + $0x190] sm:$0xff]  ;;  %v816_v53 = vld [vmem:[%s1896_s7 + $0x98] sm:$0xff] }
  0xa0   : > { %1169 = vmatpush1.bf16.msra.mxu1 %v1168_v43  ;;  %v677_v43 = vld [vmem:[#allocation7 + $0xe8] sm:$0xff]  ;;  %v1236_v17 = vpack.c.bf16 %v698_v14, %v696_v13  ;;  %v803_v4 = vld [vmem:[%s1896_s7 + $0x30] sm:$0xff]  ;;  %v824_v13 = vld [vmem:[%s1896_s7 + $0xd8] sm:$0xff] }
  0xa1   : > { %1117 = vmatpush1.bf16.msra.mxu0 %v1116_v23  ;;  %1171 = vmatprep.subr.bf16.mxu1 %v1170_v44  ;;  %v660_v23 = vld [vmem:[#allocation7 + $0x60] sm:$0xff]  ;;  %v679_v44 = vld [vmem:[#allocation7 + $0xf8] sm:$0xff]  ;;  %v822_v7 = vld [vmem:[%s1896_s7 + $0xc8] sm:$0xff] }
  0xa2   : > { %1119 = vmatprep.subr.bf16.mxu0 %v1118_v26  ;;  %v667_v26 = vld [vmem:[#allocation7 + $0x98] sm:$0xff]  ;;  %v1200_v27 = vpack.c.bf16 %v662_v24, %v660_v23  ;;  %v1214_v46 = vpack.c.bf16 %v679_v44, %v677_v43  ;;  %v1240_v23 = vpack.c.bf16 %v702_v20, %v700_v19  ;;  %v1246_v43 = vpack.c.bf16 %v711_v42, %v709_v41  ;;  %v708_v44 = vld [vmem:[#allocation7 + $0x1e0] sm:$0xff]  ;;  %v826_v19 = vld [vmem:[%s1896_s7 + $0xe8] sm:$0xff] }
  0xa3   : > { %v1202_v28 = vpack.c.bf16 %v667_v26, %v665_v25  ;;  %v416_v25 = vlaneseq  ;;  %v712_v42 = vld [vmem:[%s1895_s6] sm:$0x3] }
  0xa4   : > { %1173 = vmatpush1.bf16.msra.mxu1 %v1172_v49  ;;  %v681_v49 = vld [vmem:[#allocation7 + $0x108] sm:$0xff] }
  0xa5   : > { %1121 = vmatpush1.bf16.msra.mxu0 %v1120_v33  ;;  %1175 = vmatprep.subr.bf16.mxu1 %v1174_v50  ;;  %v1204_v33 = vpack.c.bf16 %v666_v30, %v664_v29  ;;  %v683_v50 = vld [vmem:[#allocation7 + $0x118] sm:$0xff]  ;;  %v417_v26 = vshrl.u32 %v416_v25, 7 }
  0xa6   : > { %1187 = vmatprep.subr.bf16.mxu0 %v1186_v5  ;;  %v1218_v52 = vpack.c.bf16 %v683_v50, %v681_v49  ;;  %v797_v49 = vld [vmem:[%s1896_s7] sm:$0xff]  ;;  %v1250_v50 = vpack.c.bf16 %v814_v48, %v813_v47 }
  0xa7   : > { %v1732_v29 = vsub.s32 1, %v417_v26 }
  0xa8   : > { %491 = vmatmul.mubr.f32.vlgmr.msra.gmra.mrb[0].mxu0 %v348_v40  ;;  %1177 = vmatpush1.bf16.msra.mxu1 %v1176_v55  ;;  %v1210_v40 = vpack.c.bf16 %v675_v38, %v673_v37  ;;  %v685_v55 = vld [vmem:[#allocation7 + $0x128] sm:$0xff]  ;;  %v704_v38 = vld [vmem:[#allocation7 + $0x1c0] sm:$0xff] }
  0xa9   : > { %1179 = vmatprep.subr.bf16.mxu1 %v1178_v56  ;;  %1189 = vmatpush1.bf16.msra.mxu0 %v1188_v9  ;;  %v687_v56 = vld [vmem:[#allocation7 + $0x138] sm:$0xff]  ;;  %v697_v9 = vld [vmem:[#allocation7 + $0x188] sm:$0xff] }
  0xaa   : > { %1191 = vmatprep.subr.bf16.mxu0 %v1190_v10  ;;  %v1222_v58 = vpack.c.bf16 %v687_v56, %v685_v55  ;;  %v699_v10 = vld [vmem:[#allocation7 + $0x198] sm:$0xff]  ;;  %v799_v56 = vld [vmem:[%s1896_s7 + $0x10] sm:$0xff] }
  0xab   : > { %v1234_v12 = vpack.c.bf16 %v699_v10, %v697_v9  ;;  %v805_v10 = vld [vmem:[%s1896_s7 + $0x40] sm:$0xff] }
  0xac   : > { %1181 = vmatpush1.bf16.msra.mxu1 %v1180_v59  ;;  %v684_v59 = vld [vmem:[#allocation7 + $0x120] sm:$0xff] }
  0xad   : > { %1183 = vmatprep.subr.bf16.mxu1 %v1182_v62  ;;  %1193 = vmatpush1.bf16.msra.mxu0 %v1192_v15  ;;  %v691_v62 = vld [vmem:[#allocation7 + $0x158] sm:$0xff]  ;;  %v1224_v63 = vpack.c.bf16 %v686_v60, %v684_v59  ;;  %v701_v15 = vld [vmem:[#allocation7 + $0x1a8] sm:$0xff] }
  0xae   : > { %1195 = vmatprep.subr.bf16.mxu0 %v1194_v16  ;;  %v1226_v0 = vpack.c.bf16 %v691_v62, %v689_v61  ;;  %v703_v16 = vld [vmem:[#allocation7 + $0x1b8] sm:$0xff]  ;;  %v818_v59 = vld [vmem:[%s1896_s7 + $0xa8] sm:$0xff]  ;;  %v801_v62 = vld [vmem:[%s1896_s7 + $0x20] sm:$0xff] }
  0xaf   : > { %v1238_v18 = vpack.c.bf16 %v703_v16, %v701_v15  ;;  %v807_v16 = vld [vmem:[%s1896_s7 + $0x50] sm:$0xff] }
  0xb0   : > { %1185 = vmatpush1.bf16.msra.mxu1 %v1184_v1  ;;  %v688_v1 = vld [vmem:[#allocation7 + $0x140] sm:$0xff] }
  0xb1   : > { %1197 = vmatpush1.bf16.msra.mxu0 %v1196_v21  ;;  %v1228_v5 = vpack.c.bf16 %v690_v2, %v688_v1  ;;  %v705_v21 = vld [vmem:[#allocation7 + $0x1c8] sm:$0xff]  ;;  %1251 = vmatprep.subr.bf16.mxu1 %v1250_v50  ;;  %v820_v1 = vld [vmem:[%s1896_s7 + $0xb8] sm:$0xff] }
  0xb2   : > { %1199 = vmatprep.subr.bf16.mxu0 %v1198_v22  ;;  %v707_v22 = vld [vmem:[#allocation7 + $0x1d8] sm:$0xff] }
  0xb3   : > { %v1242_v24 = vpack.c.bf16 %v707_v22, %v705_v21  ;;  %v563_v22 = vld [vmem:[%s1893_s4] sm:$0x3] }
  0xb5   : > { %1201 = vmatpush1.bf16.msra.mxu0 %v1200_v27  ;;  %v1727_v27 = vsub.s32 0, %v417_v26 }
  0xb6   : > { %1203 = vmatprep.subr.bf16.mxu0 %v1202_v28  ;;  %v414_v28 = vld [vmem:[%s1891_s2] sm:$0x3] }
  0xb7   : > { %v419_v30 = vrot.slane %v414_v28, %v1727_v27  ;;  %v423_v31 = vrot.slane %v414_v28, %v1732_v29 }
  0xb9   : > { %1205 = vmatpush1.bf16.msra.mxu0 %v1204_v33 }
  0xba   : > { %1207 = vmatprep.subr.bf16.mxu0 %v1206_v34 }
  0xbd   : > { %1209 = vmatpush1.bf16.msra.mxu0 %v1208_v39  ;;  %v706_v39 = vld [vmem:[#allocation7 + $0x1d0] sm:$0xff] }
  0xbe   : > { %1211 = vmatprep.subr.bf16.mxu0 %v1210_v40  ;;  %v1244_v40 = vpack.c.bf16 %v706_v39, %v704_v38  ;;  %v811_v39 = vld [vmem:[%s1896_s7 + $0x70] sm:$0xff] }
  0xc1   : > { %1213 = vmatpush1.bf16.msra.mxu0 %v1212_v45  ;;  %v710_v45 = vld [vmem:[#allocation7 + $0x1f0] sm:$0xff] }
  0xc2   : > { %1215 = vmatprep.subr.bf16.mxu0 %v1214_v46  ;;  %v1248_v46 = vpack.c.bf16 %v710_v45, %v708_v44  ;;  %v721_v44 = vrot.slane %v712_v42, %v1732_v29 }
  0xc5   : > { %1217 = vmatpush1.bf16.msra.mxu0 %v1216_v51  ;;  %v798_v51 = vld [vmem:[%s1896_s7 + $0x8] sm:$0xff] }
  0xc6   : > { %1219 = vmatprep.subr.bf16.mxu0 %v1218_v52  ;;  %v815_v52 = vld [vmem:[%s1896_s7 + $0x90] sm:$0xff]  ;;  %v1252_v54 = vpack.c.bf16 %v798_v51, %v797_v49 }
  0xc7   : > { %v1254_v55 = vpack.c.bf16 %v816_v53, %v815_v52 }
  0xc9   : > { %1221 = vmatpush1.bf16.msra.mxu0 %v1220_v57  ;;  %v800_v57 = vld [vmem:[%s1896_s7 + $0x18] sm:$0xff] }
  0xca   : > { %1223 = vmatprep.subr.bf16.mxu0 %v1222_v58  ;;  %v817_v58 = vld [vmem:[%s1896_s7 + $0xa0] sm:$0xff]  ;;  %v1256_v60 = vpack.c.bf16 %v800_v57, %v799_v56 }
  0xcb   : > { %v1258_v61 = vpack.c.bf16 %v818_v59, %v817_v58 }
  0xcd   : > { %1225 = vmatpush1.bf16.msra.mxu0 %v1224_v63  ;;  %v802_v63 = vld [vmem:[%s1896_s7 + $0x28] sm:$0xff] }
  0xce   : > { %1227 = vmatprep.subr.bf16.mxu0 %v1226_v0  ;;  %v819_v0 = vld [vmem:[%s1896_s7 + $0xb0] sm:$0xff]  ;;  %v1260_v2 = vpack.c.bf16 %v802_v63, %v801_v62 }
  0xcf   : > { %v1262_v3 = vpack.c.bf16 %v820_v1, %v819_v0 }
  0xd1   : > { %1229 = vmatpush1.bf16.msra.mxu0 %v1228_v5  ;;  %v804_v5 = vld [vmem:[%s1896_s7 + $0x38] sm:$0xff] }
  0xd2   : > { %1231 = vmatprep.subr.bf16.mxu0 %v1230_v6  ;;  %v821_v6 = vld [vmem:[%s1896_s7 + $0xc0] sm:$0xff]  ;;  %v1264_v8 = vpack.c.bf16 %v804_v5, %v803_v4 }
  0xd3   : > { %v1266_v9 = vpack.c.bf16 %v822_v7, %v821_v6 }
  0xd5   : > { %1233 = vmatpush1.bf16.msra.mxu0 %v1232_v11  ;;  %v806_v11 = vld [vmem:[%s1896_s7 + $0x48] sm:$0xff] }
  0xd6   : > { %1235 = vmatprep.subr.bf16.mxu0 %v1234_v12  ;;  %v823_v12 = vld [vmem:[%s1896_s7 + $0xd0] sm:$0xff]  ;;  %v1268_v14 = vpack.c.bf16 %v806_v11, %v805_v10 }
  0xd7   : > { %v1270_v15 = vpack.c.bf16 %v824_v13, %v823_v12 }
  0xd9   : > { %1237 = vmatpush1.bf16.msra.mxu0 %v1236_v17  ;;  %v808_v17 = vld [vmem:[%s1896_s7 + $0x58] sm:$0xff] }
  0xda   : > { %1239 = vmatprep.subr.bf16.mxu0 %v1238_v18  ;;  %v825_v18 = vld [vmem:[%s1896_s7 + $0xe0] sm:$0xff]  ;;  %v1272_v20 = vpack.c.bf16 %v808_v17, %v807_v16 }
  0xdb   : > { %v1274_v21 = vpack.c.bf16 %v826_v19, %v825_v18 }
  0xdd   : > { %1241 = vmatpush1.bf16.msra.mxu0 %v1240_v23  ;;  %v568_v23 = vrot.slane %v563_v22, %v1727_v27 }
  0xde   : > { %1243 = vmatprep.subr.bf16.mxu0 %v1242_v24  ;;  %v572_v24 = vrot.slane %v563_v22, %v1732_v29 }
  0xe1   : > { %1245 = vmatpush1.bf16.msra.mxu0 %v1244_v40  ;;  %v812_v40 = vld [vmem:[%s1896_s7 + $0x78] sm:$0xff] }
  0xe2   : > { %1247 = vmatprep.subr.bf16.mxu0 %v1246_v43  ;;  %v1280_v41 = vpack.c.bf16 %v812_v40, %v811_v39  ;;  %v717_v43 = vrot.slane %v712_v42, %v1727_v27 }
  0xe5   : > { %1249 = vmatpush1.bf16.msra.mxu0 %v1248_v46 }
 0x17b   : > { %v492_v32 = vpop.f32.mrb[0].mxu0 }
 0x17c   : > { %v493_v33 = vadd.f32 %v492_v32, %v419_v30  ;;  %v494_v34 = vpop.f32.mrb[1].mxu0 }
 0x17d   : > { %v495_v35 = vadd.f32 %v494_v34, %v423_v31  ;;  %v810_v34 = vld [vmem:[%s1896_s7 + $0x68] sm:$0xff] }
 0x17e   : > { %v497_v37 = vmax.f32 %v493_v33, 0.0  ;;  %v809_v33 = vld [vmem:[%s1896_s7 + $0x60] sm:$0xff] }
 0x17f   : > { %v498_v36 = vmax.f32 %v495_v35, 0.0  ;;  %v1276_v35 = vpack.c.bf16 %v810_v34, %v809_v33 }
 0x181   : > { %639 = vmatprep.mubr.f32.mxu1 %v498_v36  ;;  %v827_v36 = vld [vmem:[%s1896_s7 + $0xf0] sm:$0xff] }
 0x182   : > { %640 = vmatmul.mubr.f32.vlgmr.msra.gmra.mrb[0].mxu1 %v497_v37  ;;  %v828_v37 = vld [vmem:[%s1896_s7 + $0xf8] sm:$0xff] }
 0x183   : > { %1253 = vmatpush3.bf16.msra.mxu1 %v1252_v54  ;;  %v1278_v38 = vpack.c.bf16 %v828_v37, %v827_v36 }
 0x184   : > { %1255 = vmatprep.subr.bf16.mxu1 %v1254_v55 }
 0x187   : > { %1257 = vmatpush3.bf16.msra.mxu1 %v1256_v60 }
 0x188   : > { %1259 = vmatprep.subr.bf16.mxu1 %v1258_v61 }
 0x18b   : > { %1261 = vmatpush3.bf16.msra.mxu1 %v1260_v2 }
 0x18c   : > { %1263 = vmatprep.subr.bf16.mxu1 %v1262_v3 }
 0x18f   : > { %1265 = vmatpush3.bf16.msra.mxu1 %v1264_v8 }
 0x190   : > { %1267 = vmatprep.subr.bf16.mxu1 %v1266_v9 }
 0x193   : > { %1269 = vmatpush3.bf16.msra.mxu1 %v1268_v14 }
 0x194   : > { %1271 = vmatprep.subr.bf16.mxu1 %v1270_v15 }
 0x197   : > { %1273 = vmatpush3.bf16.msra.mxu1 %v1272_v20 }
 0x198   : > { %1275 = vmatprep.subr.bf16.mxu1 %v1274_v21 }
 0x19b   : > { %1277 = vmatpush3.bf16.msra.mxu1 %v1276_v35 }
 0x19c   : > { %1279 = vmatprep.subr.bf16.mxu1 %v1278_v38 }
 0x19f   : > { %1281 = vmatpush3.bf16.msra.mxu1 %v1280_v41 }
 0x255   : > { %v641_v25 = vpop.f32.mrb[0].mxu1 }
 0x256   : > { %v642_v26 = vadd.f32 %v641_v25, %v568_v23  ;;  %v643_v28 = vpop.f32.mrb[1].mxu1 }
 0x257   : > { %v644_v30 = vadd.f32 %v643_v28, %v572_v24 }
 0x258   : > { %v646_v32 = vmax.f32 %v642_v26, 0.0 }
 0x259   : > { %v647_v31 = vmax.f32 %v644_v30, 0.0 }
 0x25b   : > { %788 = vmatprep.mubr.f32.mxu0 %v647_v31 }
 0x25c   : > { %789 = vmatmul.mubr.f32.vlgmr.msra.gmra.mrb[2].mxu0 %v646_v32 }
 0x32f   : > { %v790_v45 = vpop.f32.mrb[2].mxu0 }
 0x330   : > { %v791_v46 = vadd.f32 %v790_v45, %v717_v43  ;;  %v792_v47 = vpop.f32.mrb[3].mxu0 }
 0x331   : > { %v793_v48 = vadd.f32 %v792_v47, %v721_v44 }
 0x332   : > { %v795_v50 = vmax.f32 %v791_v46, 0.0 }
 0x333   : > { %v796_v49 = vmax.f32 %v793_v48, 0.0 }
 0x335   : > { %893 = vmatprep.mubr.f32.mxu1 %v796_v49 }
 0x336   : > { %894 = vmatmul.mubr.f32.vlgmr.msra.gmra.mrb[2].mxu1 %v795_v50 }
 0x409   : > { %v1055_v51 = vpop.f32.mrb[2].mxu1 }
 0x40a   : > { %v1056_v52 = vpop.f32.mrb[3].mxu1 }
 0x40b   : > { %v1057_v27 = vadd.f32 %v1056_v52, %v1055_v51 }
 0x40d   : > { %900 = vst.msk [vmem:[%s342_s13] sm:$0xff] %vm899_vm0, %v1057_v27 }
 0x40e   : > { %1451 = shalt.err (!%p1448_p9)
}
 0x40f   : > { %s1452_s24 = scalar_lea.hbm %s1847_s19, 128  ;;  %s1456_s10 = scalar_lea.hbm %s1897_s8, 256 }
 0x410   : > { %p1453_p2 = scmp.ne.s32.totalorder %s1847_s19, %s1452_s24  ;;  %p1457_p5 = scmp.lt.u32.totalorder %s1847_s19, %s1897_s8 }
 0x411   : > { %p1458_p10 = scmp.lt.u32.totalorder %s1456_s10, %s1452_s24  ;;  %p1460_p4 = scmp.lt.u32.totalorder %s1452_s24, %s1847_s19 }
 0x412   : > { %p1454_p0 = pnand %p1453_p2, %p1919_p7 }
 0x413   : > { %p1459_p12 = por %p1458_p10, %p1457_p5 }
 0x414   : > { %p1455_p3 = pneg %p1454_p0 }
 0x415   : > { %p1461_p8 = por %p1460_p4, %p1459_p12 }
 0x417   : > { %p1462_p11 = pnand %p1461_p8, %p1455_p3 }
 0x419   : > { %1465 = shalt.err (!%p1462_p11)
}
 0x41a   : > { %1294 = dma.vmem_to_hbm [thread:$0]  (%p1919_p7), %s1849_s21, 128, %s1847_s19, %s902_s22  }
 0x41b PF: > { %s1920_s16 = sld [smem:[#allocation15_spill]]  ;;  %p1316_p13 = scmp.ge.s32.totalorder %s1508_s30, 2 }
 0x41c   : > { %s927_s12 = sand.u32 1, %s1496_s27  }
 0x41d   : > { %s928_s13 = scalar_lea.sflag [#allocation4], %s927_s12 }
 0x421   : > { %p1921_p1 = scmp.ne.s32.totalorder %s1920_s16, 0 }
 0x423   : > { %p1307_p6 = pnand %p1316_p13, %p1921_p1 }
 0x425   : > { %1491 = dma.done.wait (!%p1307_p6), %s928_s13, 128  }
 0x426   : > { %1493 = vsyncadd (!%p1307_p6), %s928_s13, 4294967168  ;;  %s1922_s30 = sld [smem:[#allocation13_spill]]  ;;  %s1923_s23 = sld [smem:[#allocation12_spill]] }
 0x427   : > { %s1924_s29 = sld [smem:[#allocation14_spill]]  ;;  %s1925_s27 = smov %s1500_s28 }
 0x42c   : > { %p20_p9 = scmp.ge.s32.totalorder %s1922_s30, 4   ;;  %s1926_s28 = smov %s1923_s23 }
 0x42e   :  { %22 = sbr.rel (!%p20_p9) target bundleno = 5 (0x5), region = 100 }
 0x435   :  { %933 = vsyncpa [#allocation3], 1 }
 0x436   :  { %935 = vsyncpa [#allocation3 + $0x1], 1 }
 0x437   :  { %936 = vsyncpa [#allocation6], 1 }
 0x438   :  { %937 = vsyncpa [#allocation4], 1 }
 0x439   :  { %939 = vsyncpa [#allocation4 + $0x1], 1 }

</bundles_post_ra>
